<compile_context>
chip_gen: v7x
topology: tpu7x:2x2x1
jax: 0.10.0
libtpu: 0.0.40
codegen_flags: <defaults>
</compile_context>

<pallas_src>
import math

import jax
import jax.numpy as jnp
from jax.experimental import pallas as pl
from jax.experimental.pallas import tpu as pltpu

V_THRESHOLD = 1.0
V_RESET = 0.0


def _residual_spiking_kernel(sig1_ref,       # SMEM (1,) f32: sigmoid(w1), PLIF-1 gate
                             x_mm_ref,       # (TM, TK) f32  x tile, spike/matmul path
                             x_res_ref,      # (TM, TN) f32  x tile, residual add
                             wt_ref,         # (TK, TN) bf16 pre-transposed weight tile
                             thr2_ref,       # (1, TN) f32   folded PLIF-2 threshold row
                             o_ref,          # (TM, TN) f32  output tile
                             acc_ref):       # (TM, TN) f32  VMEM accumulator
    k = pl.program_id(2)

    @pl.when(k == 0)
    def _():
        acc_ref[...] = jnp.zeros_like(acc_ref)

    # --- lif1 (fresh state, v_reset = 0): v1 = sigmoid(w1) * x; Heaviside fire.
    s1 = (sig1_ref[0] * x_mm_ref[...] >= V_THRESHOLD).astype(wt_ref.dtype)

    # --- fc partial product on the MXU (bf16 x bf16 -> f32 accumulate) --------
    acc_ref[...] += jnp.dot(s1, wt_ref[...], preferred_element_type=jnp.float32)

    # --- epilogue: lif2 fire = one compare vs thr2 (bias/sig2/v_th pre-folded),
    #     residual add, lane-dense f32 store.
    @pl.when(k == pl.num_programs(2) - 1)
    def _():
        s2 = (acc_ref[...] >= thr2_ref[...]).astype(jnp.float32)
        o_ref[...] = s2 + x_res_ref[...]


def prepare_params(fc_w, fc_b, plif_w1, plif_w2, weight_dtype=jnp.bfloat16):
    """One-time parameter preprocessing (outside the hot path).

    - Transposes the torch-layout (out, in) weight to (in, out) and casts it to
      a compact MXU dtype (bf16; spikes are 0/1 so they are exact in bf16).
    - Folds bias, sigmoid(w2) and v_threshold of the second PLIF node into a
      single per-column threshold row:
          sigmoid(w2) * (y + b) >= v_th   <=>   y >= v_th / sigmoid(w2) - b
    - Precomputes sigmoid(w1) as an SMEM scalar for the first PLIF node.
    """
    wt = jnp.asarray(fc_w).T.astype(weight_dtype)                     # (D_in, D_out)
    sig1 = jax.nn.sigmoid(jnp.asarray(plif_w1, jnp.float32)).reshape(1)
    sig2 = jax.nn.sigmoid(jnp.asarray(plif_w2, jnp.float32))
    thr2 = (V_THRESHOLD / sig2 - jnp.asarray(fc_b, jnp.float32)).reshape(1, -1)
    return wt, thr2, sig1


def residual_spiking_layer(x, wt, thr2, sig1, *, tm=None, tn=None, tk=None):
    """x: (B, D) f32. wt: (D, D) pre-transposed (in, out). thr2: (1, D). sig1: (1,)."""
    B, D = x.shape
    assert wt.shape == (D, D) and thr2.shape == (1, D) and sig1.shape == (1,)

    # Tile sizes: as large as comfortably fits VMEM; multiples of (8, 128) or full dim.
    tm = tm if tm is not None else min(B, 256)
    tn = tn if tn is not None else min(D, 512)
    tk = tk if tk is not None else min(D, 512)
    assert B % tm == 0 and D % tn == 0 and D % tk == 0
    assert (tm % 8 == 0) or (tm == B)
    assert (tn % 128 == 0) or (tn == D)
    assert (tk % 128 == 0) or (tk == D)

    grid = (B // tm, D // tn, D // tk)

    # Scoped-VMEM budget: double-buffered input/output tiles + accumulator, 2x headroom.
    wt_bytes = tk * tn * wt.dtype.itemsize
    vmem_est = 2 * (tm * tk * 4 + tm * tn * 4 + wt_bytes + tn * 4 + tm * tn * 4) \
        + tm * tn * 4
    vmem_limit = min(max(2 * vmem_est, 16 * 1024 * 1024), 64 * 1024 * 1024)

    cost = pl.CostEstimate(
        flops=2 * B * D * D,
        transcendentals=0,
        bytes_accessed=(B * D * 4 * (D // tn)     # x matmul view re-streamed per N tile
                        + B * D * 4               # x residual view
                        + D * D * wt.dtype.itemsize
                        + D * 4
                        + B * D * 4),
    )

    return pl.pallas_call(
        _residual_spiking_kernel,
        out_shape=jax.ShapeDtypeStruct((B, D), jnp.float32),
        grid_spec=pltpu.PrefetchScalarGridSpec(
            num_scalar_prefetch=1,                                       # sig1 -> SMEM
            grid=grid,
            in_specs=[
                pl.BlockSpec((tm, tk), lambda i, j, k, sig1: (i, k)),    # x, matmul path
                pl.BlockSpec((tm, tn), lambda i, j, k, sig1: (i, j)),    # x, residual slice
                pl.BlockSpec((tk, tn), lambda i, j, k, sig1: (k, j)),    # W^T tile (bf16)
                pl.BlockSpec((1, tn), lambda i, j, k, sig1: (0, j)),     # folded threshold row
            ],
            out_specs=pl.BlockSpec((tm, tn), lambda i, j, k, sig1: (i, j)),
            scratch_shapes=[pltpu.VMEM((tm, tn), jnp.float32)],
        ),
        compiler_params=pltpu.CompilerParams(
            dimension_semantics=("parallel", "parallel", "arbitrary"),
            vmem_limit_bytes=vmem_limit,
        ),
        cost_estimate=cost,
    )(sig1, x, x, wt, thr2)


def reference(x, fc_w, fc_b, plif_w1, plif_w2, weight_dtype=jnp.float32):
    """Pure-JAX reference of the PyTorch forward. Returns (output, lif2 membrane v)."""
    sig1 = jax.nn.sigmoid(plif_w1)
    sig2 = jax.nn.sigmoid(plif_w2)
    s1 = (sig1 * x >= V_THRESHOLD).astype(jnp.float32)
    w = fc_w.astype(weight_dtype).astype(jnp.float32)
    y = jnp.dot(s1, w.T, precision=jax.lax.Precision.HIGHEST) + fc_b
    v2 = sig2 * y
    s2 = (v2 >= V_THRESHOLD).astype(jnp.float32)
    return s2 + x, v2


if __name__ == "__main__":
    # Small shapes that still exercise the full 3-D tiling: grid = (2, 2, 2).
    B, D = 16, 256

    key = jax.random.PRNGKey(0)
    kx, kw, kb = jax.random.split(key, 3)

    # Input scaled so a reasonable fraction of neurons cross the threshold.
    x = 3.0 * jax.random.normal(kx, (B, D), dtype=jnp.float32)

    # nn.Linear(input_dim, input_dim) params, torch (out, in) layout.
    bound = 1.0 / math.sqrt(D)
    fc_w = jax.random.uniform(kw, (D, D), jnp.float32, -bound, bound)
    fc_b = jax.random.uniform(kb, (D,), jnp.float32, -bound, bound)

    # PLIFNode w: init_w = -log(init_tau - 1), init_tau = 2.0 -> w = 0 -> sigmoid = 0.5
    init_w = -math.log(2.0 - 1.0)
    plif_w1 = jnp.array(init_w, dtype=jnp.float32)
    plif_w2 = jnp.array(init_w, dtype=jnp.float32)

    # Parameter prep happens ONCE, outside the hot path
    # (transpose + bf16 cast + sigmoid / threshold folding).
    wt, thr2, sig1 = prepare_params(fc_w, fc_b, plif_w1, plif_w2,
                                    weight_dtype=jnp.bfloat16)

    out = residual_spiking_layer(x, wt, thr2, sig1, tm=8, tn=128, tk=128)
    out = jax.block_until_ready(out)

    # Reference with the same bf16-rounded weights. The Heaviside makes the
    # output non-smooth, so ignore (measure-zero) points whose membrane
    # potential sits within float rounding of the threshold.
    ref, v2 = reference(x, fc_w, fc_b, plif_w1, plif_w2, weight_dtype=jnp.bfloat16)
    near_threshold = jnp.abs(v2 - V_THRESHOLD) < 1e-4
    ok = jnp.logical_or(near_threshold, jnp.abs(out - ref) < 1e-4)

    assert out.shape == (B, D)
    assert bool(jnp.all(ok)), "mismatch vs reference"

    print("KERNEL_OK")
</pallas_src>

<mosaic_0001>
module attributes {stable_mosaic.version = 11 : i64} {
  func.func @_residual_spiking_kernel(%arg0: i32, %arg1: i32, %arg2: i32, %arg3: memref<1xf32, #tpu.memory_space<smem>>, %arg4: memref<8x128xf32, #tpu.memory_space<vmem>>, %arg5: memref<8x128xf32, #tpu.memory_space<vmem>>, %arg6: memref<128x128xbf16, #tpu.memory_space<vmem>>, %arg7: memref<1x128xf32, #tpu.memory_space<vmem>>, %arg8: memref<8x128xf32, #tpu.memory_space<vmem>>, %arg9: memref<8x128xf32, #tpu.memory_space<vmem>>) attributes {dimension_semantics = [#tpu.dimension_semantics<parallel>, #tpu.dimension_semantics<parallel>, #tpu.dimension_semantics<arbitrary>], iteration_bounds = array<i64: 2, 2, 2>, scalar_prefetch = 1 : i64, scratch_operands = 1 : i64, tpu.core_type = #tpu.core_type<tc>, window_params = [{transform_indices = @transform_0, window_bounds = array<i64: 8, 128>}, {transform_indices = @transform_1, window_bounds = array<i64: 8, 128>}, {transform_indices = @transform_2, window_bounds = array<i64: 128, 128>}, {transform_indices = @transform_3, window_bounds = array<i64: 1, 128>}, {transform_indices = @transform_4, window_bounds = array<i64: 8, 128>}]} {
    %c0_i32 = arith.constant 0 : i32
    %0 = arith.cmpi eq, %arg2, %c0_i32 : i32
    %1 = arith.extui %0 : i1 to i32
    %c0_i32_0 = arith.constant 0 : i32
    %2 = arith.cmpi ne, %1, %c0_i32_0 : i32
    scf.if %2 {
      %cst_11 = arith.constant 0.000000e+00 : f32
      %20 = vector.broadcast %cst_11 : f32 to vector<8x128xf32>
      %c0_12 = arith.constant 0 : index
      %c0_13 = arith.constant 0 : index
      %21 = vector.load %arg9[%c0_12, %c0_13] : memref<8x128xf32, #tpu.memory_space<vmem>>, vector<8x128xf32>
      tpu.vector_store %arg9[%c0_12, %c0_13], %20 {strides = array<i32>} : memref<8x128xf32, #tpu.memory_space<vmem>>, vector<8x128xf32>,
    } else {
    }
    %c0 = arith.constant 0 : index
    %3 = memref.load %arg3[%c0] : memref<1xf32, #tpu.memory_space<smem>>
    %c0_1 = arith.constant 0 : index
    %c0_2 = arith.constant 0 : index
    %4 = vector.load %arg4[%c0_1, %c0_2] : memref<8x128xf32, #tpu.memory_space<vmem>>, vector<8x128xf32>
    %5 = vector.broadcast %3 : f32 to vector<8x128xf32>
    %6 = arith.mulf %5, %4 : vector<8x128xf32>
    %cst = arith.constant 1.000000e+00 : f32
    %7 = vector.broadcast %cst : f32 to vector<8x128xf32>
    %8 = arith.cmpf oge, %6, %7 : vector<8x128xf32>
    %9 = arith.extui %8 : vector<8x128xi1> to vector<8x128xi32>
    %10 = arith.sitofp %9 : vector<8x128xi32> to vector<8x128xf32>
    %11 = arith.truncf %10 : vector<8x128xf32> to vector<8x128xbf16>
    %c0_3 = arith.constant 0 : index
    %c0_4 = arith.constant 0 : index
    %12 = vector.load %arg9[%c0_3, %c0_4] : memref<8x128xf32, #tpu.memory_space<vmem>>, vector<8x128xf32>
    %c0_5 = arith.constant 0 : index
    %c0_6 = arith.constant 0 : index
    %13 = vector.load %arg6[%c0_5, %c0_6] : memref<128x128xbf16, #tpu.memory_space<vmem>>, vector<128x128xbf16>
    %cst_7 = arith.constant dense<0.000000e+00> : vector<8x128xf32>
    %14 = tpu.matmul %11, %13, %cst_7 {dimension_numbers = #tpu.dot_dimension_numbers<[1], [0], [0], [1], [0, 0, 1, 1], [], []>} : vector<8x128xbf16>, vector<128x128xbf16>, vector<8x128xf32> -> vector<8x128xf32>
    %15 = arith.addf %12, %14 : vector<8x128xf32>
    %c0_8 = arith.constant 0 : index
    %c0_9 = arith.constant 0 : index
    %16 = vector.load %arg9[%c0_8, %c0_9] : memref<8x128xf32, #tpu.memory_space<vmem>>, vector<8x128xf32>
    tpu.vector_store %arg9[%c0_8, %c0_9], %15 {strides = array<i32>} : memref<8x128xf32, #tpu.memory_space<vmem>>, vector<8x128xf32>,
    %c1_i32 = arith.constant 1 : i32
    %17 = arith.cmpi eq, %arg2, %c1_i32 : i32
    %18 = arith.extui %17 : i1 to i32
    %c0_i32_10 = arith.constant 0 : i32
    %19 = arith.cmpi ne, %18, %c0_i32_10 : i32
    scf.if %19 {
      %c0_11 = arith.constant 0 : index
      %c0_12 = arith.constant 0 : index
      %20 = vector.load %arg9[%c0_11, %c0_12] : memref<8x128xf32, #tpu.memory_space<vmem>>, vector<8x128xf32>
      %c0_13 = arith.constant 0 : index
      %c0_14 = arith.constant 0 : index
      %21 = vector.load %arg7[%c0_13, %c0_14] : memref<1x128xf32, #tpu.memory_space<vmem>>, vector<1x128xf32>
      %22 = vector.broadcast %21 : vector<1x128xf32> to vector<8x128xf32>
      %23 = arith.cmpf oge, %20, %22 : vector<8x128xf32>
      %24 = arith.extui %23 : vector<8x128xi1> to vector<8x128xi32>
      %25 = arith.sitofp %24 : vector<8x128xi32> to vector<8x128xf32>
      %c0_15 = arith.constant 0 : index
      %c0_16 = arith.constant 0 : index
      %26 = vector.load %arg5[%c0_15, %c0_16] : memref<8x128xf32, #tpu.memory_space<vmem>>, vector<8x128xf32>
      %27 = arith.addf %25, %26 : vector<8x128xf32>
      %c0_17 = arith.constant 0 : index
      %c0_18 = arith.constant 0 : index
      %28 = vector.load %arg8[%c0_17, %c0_18] : memref<8x128xf32, #tpu.memory_space<vmem>>, vector<8x128xf32>
      tpu.vector_store %arg8[%c0_17, %c0_18], %27 {strides = array<i32>} : memref<8x128xf32, #tpu.memory_space<vmem>>, vector<8x128xf32>,
    } else {
    }
    return
  }
  func.func @transform_0(%arg0: i32, %arg1: i32, %arg2: i32, %arg3: memref<1xf32, #tpu.memory_space<smem>>) -> (i32, i32) {
    %c0_i32 = arith.constant 0 : i32
    return %arg0, %arg2 : i32, i32
  }
  func.func @transform_1(%arg0: i32, %arg1: i32, %arg2: i32, %arg3: memref<1xf32, #tpu.memory_space<smem>>) -> (i32, i32) {
    %c0_i32 = arith.constant 0 : i32
    return %arg0, %arg1 : i32, i32
  }
  func.func @transform_2(%arg0: i32, %arg1: i32, %arg2: i32, %arg3: memref<1xf32, #tpu.memory_space<smem>>) -> (i32, i32) {
    %c0_i32 = arith.constant 0 : i32
    return %arg2, %arg1 : i32, i32
  }
  func.func @transform_3(%arg0: i32, %arg1: i32, %arg2: i32, %arg3: memref<1xf32, #tpu.memory_space<smem>>) -> (i32, i32) {
    %c0_i32 = arith.constant 0 : i32
    %c0_i32_0 = arith.constant 0 : i32
    return %c0_i32, %arg1 : i32, i32
  }
  func.func @transform_4(%arg0: i32, %arg1: i32, %arg2: i32, %arg3: memref<1xf32, #tpu.memory_space<smem>>) -> (i32, i32) {
    %c0_i32 = arith.constant 0 : i32
    return %arg0, %arg1 : i32, i32
  }
}

</mosaic_0001>

<bundles_post_ra>
// kernel: tpu_custom_call.1
= control target key start
LH: loop header
LB: loop body
LE: loop exit
PB: predicated region body
PF: predicated region fallthrough
CT: control target
= control target key end

     0   :  { %s1657_s0 = inlined_call_operand.<no memory space> [shape: f32[1], index: 0, kind: input, shape index: {}]   ;;  %s1658_s1 = inlined_call_operand.hbm [shape: f32[16,256], index: 1, kind: input, shape index: {}]   ;;  %s1659_s2 = inlined_call_operand.hbm [shape: f32[16,256], index: 2, kind: input, shape index: {}]   ;;  %s1660_s3 = inlined_call_operand.hbm [shape: bf16[256,256], index: 3, kind: input, shape index: {}]   ;;  %s1661_s4 = inlined_call_operand.vmem [shape: f32[1,256], index: 4, kind: input, shape index: {}]   ;;  %s1662_s5 = inlined_call_operand.hbm [shape: f32[16,256], index: 5, kind: output, shape index: {}]  }
   0x1   :  { %1692 = sst [smem:[#allocation34_spill]] %s1659_s2 }
   0x2   :  { %1693 = sst [smem:[#allocation35_spill]] %s1661_s4 }
   0x3   :  { %1694 = sst [smem:[#allocation36_spill]] %s1662_s5 }
   0x4   :  { %10 = sst [smem:[#allocation4]] %s1657_s0 }
   0x5   :  { %11 = vsyncpa [#allocation6], 0 }
   0x6   :  { %13 = vsyncpa [#allocation6 + $0x1], 0 }
   0x7   :  { %14 = vsyncpa [#allocation9], 0 }
   0x8   :  { %16 = vsyncpa [#allocation9 + $0x1], 0 }
   0x9   :  { %17 = vsyncpa [#allocation7], 0 }
   0xa   :  { %19 = vsyncpa [#allocation7 + $0x1], 0  ;;  %s1183_s20 = smov 0   ;;  %s1185_s21 = smov 0  }
   0xb   :  { %s1187_s22 = smov 0   ;;  %s1189_s23 = smov 0  }
   0xc   :  { %s1191_s24 = smov 0   ;;  %s1193_s25 = smov 0  }
   0xd   :  { %s1195_s26 = smov 0   ;;  %s1197_s0 = smov 0  }
   0xe   :  { %s1199_s27 = smov 0   ;;  %s1201_s28 = smov 0  }
   0xf   :  { %s1203_s29 = smov 0   ;;  %s1205_s30 = smov 0  }
  0x10   :  { %s1207_s6 = smov 0   ;;  %s1209_s7 = smov 0  }
  0x11   :  { %s1211_s8 = smov 0   ;;  %s1213_s9 = smov 0  }
  0x12 LB: > { %1695 = sst [smem:[#allocation16_spill]] %s1080_s21  ;;  %s1264_s10 = sadd.s32 4294967295, %s1136_s9   ;;  %s1136_s9 = sphi %s1213_s9, %s25_s9   ;;  %s1132_s8 = sphi %s1211_s8, %s1781_s8   ;;  %s1128_s7 = sphi %s1209_s7, %s1780_s7   ;;  %s1124_s6 = sphi %s1207_s6, %s1779_s6   ;;  %s1120_s30 = sphi %s1205_s30, %s1778_s30   ;;  %s1116_s29 = sphi %s1203_s29, %s1777_s29   ;;  %s1112_s28 = sphi %s1201_s28, %s1776_s28   ;;  %s1108_s27 = sphi %s1199_s27, %s1775_s27   ;;  %s1104_s0 = sphi %s1197_s0, %s1774_s0   ;;  %s1100_s26 = sphi %s1195_s26, %s1773_s26   ;;  %s1096_s25 = sphi %s1193_s25, %s1772_s25   ;;  %s1092_s24 = sphi %s1191_s24, %s1771_s24   ;;  %s1088_s23 = sphi %s1189_s23, %s1764_s23   ;;  %s1084_s22 = sphi %s1187_s22, %s1770_s22   ;;  %s1080_s21 = sphi %s1185_s21, %s1769_s21   ;;  %s1076_s20 = sphi %s1183_s20, %s1762_s20  }
  0x13   : > { %1696 = sst [smem:[#allocation17_spill]] %s1088_s23  ;;  %s640_s11 = sadd.s32 4294967294, %s1136_s9  }
  0x14   : > { %1697 = sst [smem:[#allocation18_spill]] %s1092_s24  ;;  %p1669_p0 = scmp.eq.s32.totalorder %s1136_s9, 0 }
  0x15   : > { %1698 = sst [smem:[#allocation19_spill]] %s1104_s0  ;;  %p1668_p1 = scmp.eq.s32.totalorder %s1264_s10, 0 }
  0x16   : > { %1699 = sst [smem:[#allocation20_spill]] %s1112_s28  ;;  %p88_p2 = scmp.ne.s32.totalorder %s1096_s25, %s1092_s24 }
  0x17   : > { %1700 = sst [smem:[#allocation21_spill]] %s1116_s29  ;;  %p94_p3 = scmp.ne.s32.totalorder %s1092_s24, %s1088_s23 }
  0x18   : > { %1701 = sst [smem:[#allocation22_spill]] %s1120_s30  ;;  %p116_p4 = scmp.ne.s32.totalorder %s1084_s22, %s1080_s21 }
  0x19   : > { %1702 = sst [smem:[#allocation23_spill]] %s1264_s10  ;;  %p1280_p5 = por %p88_p2, %p1669_p0 }
  0x1a   : > { %p122_p6 = scmp.ne.s32.totalorder %s1080_s21, %s1076_s20  ;;  %p1288_p7 = por %p94_p3, %p1668_p1 }
  0x1b   : > { %p1294_p8 = por %p116_p4, %p1669_p0  ;;  %p174_p10 = scmp.eq.s32.totalorder %s1264_s10, 7 }
  0x1c   : > { %s1704_s16 = scalar_select %p1288_p7, 1, 0 }
  0x1d   : > { %p1300_p9 = por %p122_p6, %p1668_p1  ;;  %p180_p11 = scmp.eq.s32.totalorder %s640_s11, 7 }
  0x1e   : > { %1705 = sst [smem:[#allocation24_spill]] %s1704_s16  ;;  %p1305_p12 = por %p174_p10, %p88_p2 }
  0x1f   : > { %s1707_s18 = scalar_select %p1300_p9, 1, 0 }
  0x20   : > { %s1709_s19 = scalar_select %p1305_p12, 1, 0 }
  0x21   : > { %1708 = sst [smem:[#allocation25_spill]] %s1707_s18  ;;  %p1670_p13 = scmp.lt.s32.totalorder %s1136_s9, 8 }
  0x22   : > { %1710 = sst [smem:[#allocation26_spill]] %s1709_s19  ;;  %p1310_p4 = por %p180_p11, %p94_p3 }
  0x23   : > { %s1674_s14 = sshll.u32 %s1132_s8, 1  ;;  %s220_s13 = sand.u32 1, %s1136_s9  }
  0x24   : > { %s1711_s20 = scalar_select %p1310_p4, 1, 0 }
  0x25   : > { %s222_s12 = sand.u32 1, %s1096_s25   ;;  %s229_s5 = sadd.s32 %s1128_s7, %s1674_s14 }
  0x26   : > { %1712 = sst [smem:[#allocation27_spill]] %s1711_s20  ;;  %s646_s23 = sshll.u32 %s222_s12, 3 }
  0x27   : > { %s648_s30 = sshll.u32 %s229_s5, 7  ;;  %s224_s28 = scalar_lea.vmem [#allocation8], %s646_s23 }
  0x28   : > { %s233_s11 = sshll.u32 %s224_s28, 4  ;;  %s1713_s2 = sld [smem:[#allocation34_spill]]  ;;  %s1325_s11 = int_to_ptr.vmem [resolvable:$true] %s233_s11 }
  0x29   : > { %p1331_p2 = pnand %p1670_p13, %p1280_p5  ;;  %p1339_p3 = pnand %p1670_p13, %p1294_p8 }
  0x2a   : > { %s1345_s5 = scalar_lea.sflag [#allocation9], %s220_s13 }
  0x2b   : > { %p878_p1 = pneg %p1331_p2 }
  0x2e   : > { %s1323_s18 = scalar_lea.hbm %s1713_s2, %s648_s30  ;;  %s881_s30 = scalar_lea.hbm %s1713_s2, 512 }
  0x2f   : > { %s876_s23 = scalar_lea.hbm %s1323_s18, 128  ;;  %p882_p8 = scmp.lt.u32.totalorder %s1323_s18, %s1713_s2 }
  0x30   : > { %p877_p11 = scmp.ne.s32.totalorder %s1323_s18, %s876_s23  ;;  %p883_p13 = scmp.lt.u32.totalorder %s881_s30, %s876_s23 }
  0x31   : > { %p885_p10 = scmp.lt.u32.totalorder %s876_s23, %s1323_s18 }
  0x32   : > { %p879_p5 = pnand %p878_p1, %p877_p11  ;;  %p884_p6 = por %p883_p13, %p882_p8 }
  0x34   : > { %p880_p0 = pneg %p879_p5  ;;  %p886_p4 = por %p885_p10, %p884_p6 }
  0x36   : > { %p887_p12 = pnand %p886_p4, %p880_p0 }
  0x38   : > { %890 = shalt.err (!%p887_p12)
}
  0x39   : > { %s891_s13 = scalar_lea.vmem %s1325_s11, 128  ;;  %s1138_s28 = smov [#allocation8]  }
  0x3a   : > { %p892_p11 = scmp.ne.s32.totalorder %s1325_s11, %s891_s13  ;;  %s896_s29 = sshll.u32 %s1138_s28, 4  ;;  %s897_s29 = int_to_ptr.vmem [resolvable:$false] %s896_s29 }
  0x3b   : > { %s898_s15 = scalar_lea.vmem %s897_s29, 256  ;;  %p899_p7 = scmp.lt.s32.totalorder %s1325_s11, %s897_s29 }
  0x3c   : > { %p894_p5 = pnand %p892_p11, %p878_p1  ;;  %p900_p13 = scmp.lt.s32.totalorder %s898_s15, %s891_s13 }
  0x3e   : > { %p895_p9 = pneg %p894_p5  ;;  %p901_p8 = por %p900_p13, %p899_p7 }
  0x40   : > { %p902_p6 = pnand %p901_p8, %p895_p9 }
  0x42   : > { %905 = shalt.err (!%p902_p6)
}
  0x43   : > { %722 = dma.hbm_to_vmem [thread:$0]  (!%p1331_p2), %s1323_s18, 128, %s1325_s11, %s1345_s5  }
  0x44   : > { %p1716_p0 = scmp.lt.s32.totalorder %s1136_s9, 9  ;;  %p1717_p1 = scmp.ge.s32.totalorder %s1136_s9, 1 }
  0x45   : > { %s37_s23 = sadd.s32 1, %s1124_s6  ;;  %s53_s30 = sadd.s32 1, %s1108_s27 }
  0x46   : > { %p1377_p7 = pnand %p1717_p1, %p1716_p0  ;;  %p38_p9 = scmp.ge.s32.totalorder %s37_s23, 2 }
  0x47   : > { %p60_p12 = scmp.ne.s32.totalorder %s1108_s27, %s1104_s0  ;;  %p66_p4 = scmp.ne.s32.totalorder %s1104_s0, %s1100_s26 }
  0x48   : > { %s1718_s12 = scalar_select %p1377_p7, 1, 0 }
  0x49   : > { %s1783_s23 = smov (%p38_p9, %s37_s23), 0  ;;  %s1721_s17 = sadd.s32 1, %s1128_s7 }
  0x4a   : > { %1719 = sst [smem:[#allocation28_spill]] %s1718_s12  ;;  %s1785_s17 = smov (!%p38_p9, %s1721_s17), %s1128_s7 }
  0x4b   : > { %1720 = sst [smem:[#allocation29_spill]] %s1783_s23  ;;  %s49_s18 = ssub.s32 %s1124_s6, %s1783_s23 }
  0x4c   : > { %p1722_p2 = scmp.eq.s32.totalorder %s1136_s9, 0  ;;  %p42_p11 = scmp.ge.s32.totalorder %s1785_s17, 2 }
  0x4d   : > { %p1724_p5 = scmp.eq.s32.totalorder %s1264_s10, 0  ;;  %s109_s26 = sadd.s32 1, %s1084_s22 }
  0x4e   : > { %p1396_p10 = por %p1722_p2, %p60_p12  ;;  %s200_s28 = sand.u32 1, %s1108_s27  }
  0x4f   : > { %p1402_p13 = por %p1724_p5, %p66_p4  ;;  %s1787_s17 = smov (%p42_p11, %s1785_s17), 0 }
  0x50   : > { %1727 = sst [smem:[#allocation31_spill]] %s1787_s17  ;;  %s1728_s29 = sadd.s32 1, %s1132_s8 }
  0x51   : > { %s1725_s13 = scalar_select %p1402_p13, 1, 0 }
  0x52   : > { %s1789_s29 = smov (!%p42_p11, %s1728_s29), %s1132_s8  ;;  %s77_s15 = ssub.s32 %s1128_s7, %s1787_s17 }
  0x53   : > { %1726 = sst [smem:[#allocation30_spill]] %s1725_s13  ;;  %p46_p8 = scmp.ge.s32.totalorder %s1789_s29, 2 }
  0x54   : > { %s106_s14 = sor.u32 %s77_s15, %s49_s18  ;;  %s643_s2 = sshll.u32 %s200_s28, 3 }
  0x55   : > { %p107_p6 = scmp.eq.s32.totalorder %s106_s14, 0  ;;  %s1791_s29 = smov (%p46_p8, %s1789_s29), 0 }
  0x56   : > { %1729 = sst [smem:[#allocation32_spill]] %s1791_s29  ;;  %s48_s20 = ssub.s32 %s1132_s8, %s1791_s29 }
  0x57   : > { %s1418_s23 = scalar_select %p107_p6, %s1084_s22, %s109_s26  }
  0x58   : > { %s50_s19 = sor.u32 %s49_s18, %s48_s20  ;;  %s78_s21 = sor.u32 %s77_s15, %s48_s20 }
  0x59   : > { %1730 = sst [smem:[#allocation33_spill]] %s1418_s23  ;;  %p51_p0 = scmp.eq.s32.totalorder %s50_s19, 0 }
  0x5a   : > { %p79_p1 = scmp.eq.s32.totalorder %s78_s21, 0  ;;  %s1731_s17 = sshll.u32 %s1132_s8, 1 }
  0x5b   : > { %s209_s16 = sadd.s32 %s1124_s6, %s1731_s17  ;;  %s204_s24 = scalar_lea.vmem [#allocation5], %s643_s2 }
  0x5c   : > { %s213_s14 = sshll.u32 %s204_s24, 4  ;;  %s1732_s13 = sadd.s32 1, %s1096_s25  ;;  %s1433_s14 = int_to_ptr.vmem [resolvable:$true] %s213_s14 }
  0x5d   : > { %s1426_s10 = scalar_select %p51_p0, %s1108_s27, %s53_s30  }
  0x5e   : > { %s1431_s0 = scalar_select %p79_p1, %s1096_s25, %s1732_s13  }
  0x5f   : > { %s645_s12 = sshll.u32 %s209_s16, 7  ;;  %p1733_p9 = scmp.lt.s32.totalorder %s1136_s9, 8 }
  0x60   : > { %s1438_s29 = scalar_lea.hbm %s1658_s1, %s645_s12  ;;  %s678_s21 = sshll.u32 %s1124_s6, 5 }
  0x61   : > { %p1444_p12 = pnand %p1733_p9, %p1396_p10  ;;  %s242_s24 = sand.u32 1, %s1084_s22  }
  0x62   : > { %s1451_s16 = sadd.s32 %s1128_s7, %s678_s21  ;;  %s201_s19 = scalar_lea.sflag [#allocation6], %s200_s28 }
  0x63   : > { %s906_s20 = scalar_lea.hbm %s1438_s29, 128  ;;  %p908_p2 = pneg %p1444_p12 }
  0x64   : > { %p907_p4 = scmp.ne.s32.totalorder %s1438_s29, %s906_s20  ;;  %s911_s30 = scalar_lea.hbm %s1658_s1, 512 }
  0x65   : > { %p912_p10 = scmp.lt.u32.totalorder %s1438_s29, %s1658_s1  ;;  %p913_p8 = scmp.lt.u32.totalorder %s911_s30, %s906_s20 }
  0x66   : > { %p909_p11 = pnand %p908_p2, %p907_p4  ;;  %p915_p0 = scmp.lt.u32.totalorder %s906_s20, %s1438_s29 }
  0x67   : > { %p914_p6 = por %p913_p8, %p912_p10 }
  0x68   : > { %p910_p5 = pneg %p909_p11 }
  0x69   : > { %p916_p1 = por %p915_p0, %p914_p6 }
  0x6b   : > { %p917_p9 = pnand %p916_p1, %p910_p5 }
  0x6d   : > { %920 = shalt.err (!%p917_p9)
}
  0x6e   : > { %s921_s11 = scalar_lea.vmem %s1433_s14, 128  ;;  %s1139_s13 = smov [#allocation5]  }
  0x6f   : > { %p922_p4 = scmp.ne.s32.totalorder %s1433_s14, %s921_s11  ;;  %s926_s28 = sshll.u32 %s1139_s13, 4  ;;  %s927_s28 = int_to_ptr.vmem [resolvable:$false] %s926_s28 }
  0x70   : > { %s928_s15 = scalar_lea.vmem %s927_s28, 256  ;;  %p929_p7 = scmp.lt.s32.totalorder %s1433_s14, %s927_s28 }
  0x71   : > { %p924_p11 = pnand %p922_p4, %p908_p2  ;;  %p930_p10 = scmp.lt.s32.totalorder %s928_s15, %s921_s11 }
  0x73   : > { %p925_p13 = pneg %p924_p11  ;;  %p931_p8 = por %p930_p10, %p929_p7 }
  0x75   : > { %p932_p6 = pnand %p931_p8, %p925_p13 }
  0x77   : > { %935 = shalt.err (!%p932_p6)
}
  0x78   : > { %719 = dma.hbm_to_vmem [thread:$0]  (!%p1444_p12), %s1438_s29, 128, %s1433_s14, %s201_s19  }
  0x79   : > { %s652_s26 = sshll.u32 %s1451_s16, 6  ;;  %s649_s21 = sshll.u32 %s242_s24, 6 }
  0x7a   : > { %s1484_s23 = scalar_lea.hbm %s1660_s3, %s652_s26  ;;  %s244_s2 = scalar_lea.vmem [#allocation10], %s649_s21 }
  0x7b   : > { %s253_s30 = sshll.u32 %s244_s2, 4  ;;  %s936_s17 = scalar_lea.hbm %s1484_s23, 1024  ;;  %s1486_s30 = int_to_ptr.vmem [resolvable:$true] %s253_s30 }
  0x7c   : > { %p937_p7 = scmp.ne.s32.totalorder %s1484_s23, %s936_s17  ;;  %p938_p13 = pneg %p1339_p3 }
  0x7d   : > { %s941_s24 = scalar_lea.hbm %s1660_s3, 4096  ;;  %p942_p5 = scmp.lt.u32.totalorder %s1484_s23, %s1660_s3 }
  0x7e   : > { %p939_p12 = pnand %p938_p13, %p937_p7  ;;  %p943_p0 = scmp.lt.u32.totalorder %s941_s24, %s936_s17 }
  0x7f   : > { %p945_p9 = scmp.lt.u32.totalorder %s936_s17, %s1484_s23 }
  0x80   : > { %p940_p2 = pneg %p939_p12  ;;  %p944_p1 = por %p943_p0, %p942_p5 }
  0x82   : > { %p946_p4 = por %p945_p9, %p944_p1 }
  0x84   : > { %p947_p11 = pnand %p946_p4, %p940_p2 }
  0x86   : > { %950 = shalt.err (!%p947_p11)
}
  0x87   : > { %s951_s18 = scalar_lea.vmem %s1486_s30, 1024  ;;  %s1140_s11 = smov [#allocation10]  }
  0x88   : > { %p952_p10 = scmp.ne.s32.totalorder %s1486_s30, %s951_s18  ;;  %s956_s13 = sshll.u32 %s1140_s11, 4  ;;  %s957_s13 = int_to_ptr.vmem [resolvable:$false] %s956_s13 }
  0x89   : > { %s958_s28 = scalar_lea.vmem %s957_s13, 2048  ;;  %p959_p7 = scmp.lt.s32.totalorder %s1486_s30, %s957_s13 }
  0x8a   : > { %p954_p8 = pnand %p952_p10, %p938_p13  ;;  %p960_p12 = scmp.lt.s32.totalorder %s958_s28, %s951_s18 }
  0x8c   : > { %p955_p6 = pneg %p954_p8  ;;  %p961_p5 = por %p960_p12, %p959_p7 }
  0x8e   : > { %p962_p0 = pnand %p961_p5, %p955_p6 }
  0x90   : > { %965 = shalt.err (!%p962_p0)
}
  0x91   : > { %s1141_s15 = smov 128   ;;  %s1142_s26 = smov 64  }
  0x92   : > { %s1143_s21 = smov 4   ;;  %s1735_s20 = sld [smem:[#allocation28_spill]] }
  0x93   : > { %725 = dma.hbm_to_vmem [thread:$0]  (!%p1339_p3), %s1484_s23, 1024, %s1486_s30, %s1345_s5, %s1141_s15, %s1142_s26, %s1143_s21  }
  0x98   : > { %p1736_p13 = scmp.ne.s32.totalorder %s1735_s20, 0 }
  0x99   : > { %s1737_s12 = sld [smem:[#allocation19_spill]] (!%p1736_p13)  ;;  %s1738_s2 = sld [smem:[#allocation30_spill]] (!%p1736_p13) }
  0x9a   : > { %271 = sbr.rel (%p1736_p13) target bundleno = 488 (0x1e8), region = 36 }
  0x9f   : > { %s273_s17 = sand.u32 (!%p1736_p13), 1, %s1737_s12   ;;  %p1739_p2 = scmp.ne.s32.totalorder (!%p1736_p13), %s1738_s2, 0 }
  0xa0   : > { %s1517_s29 = sshll.u32 (!%p1736_p13), %s273_s17, 3  ;;  %s274_s14 = scalar_lea.sflag (!%p1736_p13), [#allocation6], %s273_s17 }
  0xa1   : > { %s277_s24 = scalar_lea.vmem [#allocation5], %s1517_s29 }
  0xa2   : > { %1059 = dma.done.wait (%p1739_p2), %s274_s14, 128  }
  0xa3   : > { %1061 = vsyncadd (%p1739_p2), %s274_s14, 4294967168  ;;  %s1740_s16 = sld [smem:[#allocation23_spill]]  ;;  %s1741_s19 = sld [smem:[#allocation18_spill]] }
  0xa4   : > { %s1742_s4 = sld [smem:[#allocation24_spill]] }
  0xa9   : > { %s282_s5 = sand.u32 1, %s1740_s16   ;;  %s284_s23 = sand.u32 1, %s1741_s19  }
  0xaa   : > { %s1528_s30 = sshll.u32 %s284_s23, 3  ;;  %s283_s18 = scalar_lea.sflag [#allocation9], %s282_s5 }
  0xab   : > { %s286_s11 = scalar_lea.vmem [#allocation8], %s1528_s30  ;;  %p1743_p3 = scmp.ne.s32.totalorder %s1742_s4, 0 }
  0xad   : > { %1063 = dma.done.wait (%p1743_p3), %s283_s18, 128  }
  0xae   : > { %1065 = vsyncadd (%p1743_p3), %s283_s18, 4294967168  ;;  %s1744_s13 = sld [smem:[#allocation16_spill]]  ;;  %s1745_s28 = sld [smem:[#allocation25_spill]] }
  0xb4   : > { %s293_s15 = sand.u32 1, %s1744_s13   ;;  %p1746_p1 = scmp.ne.s32.totalorder %s1745_s28, 0 }
  0xb5   : > { %s656_s26 = sshll.u32 %s293_s15, 6 }
  0xb6   : > { %s1536_s21 = scalar_lea.vmem [#allocation10], %s656_s26 }
  0xb7   : > { %1067 = dma.done.wait (%p1746_p1), %s283_s18, 1024  }
  0xb8   : > { %1069 = vsyncadd (%p1746_p1), %s283_s18, 4294966272  ;;  %s1747_s20 = sld [smem:[#allocation21_spill]]  ;;  %s1748_s17 = sld [smem:[#allocation35_spill]] }
  0xb9   : > { %s332_s16 = scalar_lea.vmem [#allocation11], %s1528_s30  ;;  %s1749_s19 = sld [smem:[#allocation20_spill]] }
  0xbe   : > { %p334_p9 = scmp.lt.s32.totalorder %s1747_s20, 1 }
  0xbf   : > { %p658_p4 = scmp.ne.s32.totalorder %s1749_s19, 0 }
  0xc0   : > { %s1793_s20 = smov (!%p334_p9, %s1747_s20), 1  ;;  %v1144_v0 = vmov (!%p658_p4), 0.0  }
  0xc1   : > { %s336_s14 = scalar_lea.vmem %s1748_s17, %s1793_s20  ;;  %341 = sbr.rel (%p658_p4) target bundleno = 200 (0xc8), region = 52  ;;  %342 = vst [vmem:[#allocation2] sm:$0xff] (!%p658_p4), %v1144_v0 }
  0xc8 PF: > { %v868_v1 = vld [vmem:[%s1536_s21] sm:$0xff]   ;;  %v1145_v2 = vmov 0.0   ;;  %v869_v3 = vld [vmem:[%s1536_s21 + $0x8] sm:$0xff]   ;;  %vm1146_vm0 = vmmov 0   ;;  %v870_v4 = vld [vmem:[%s1536_s21 + $0x10] sm:$0xff]   ;;  %s343_s4 = sld [smem:[#allocation4]] }
  0xc9   : > { %688 = vmatprep.subr.bf16.mxu0 %v1145_v2  ;;  %704 = vmatprep.mubr.msk.bf16.mxu0 %vm1146_vm0, %v1145_v2  ;;  %v871_v5 = vld [vmem:[%s1536_s21 + $0x18] sm:$0xff]   ;;  %v872_v6 = vld [vmem:[%s1536_s21 + $0x20] sm:$0xff]   ;;  %v873_v7 = vld [vmem:[%s1536_s21 + $0x28] sm:$0xff]   ;;  %v1147_v13 = vmov 1.0|1.0   ;;  %s1750_s29 = sld [smem:[#allocation20_spill]] }
  0xca   : > { %689 = vmatpush3.bf16.msra.mxu0 %v868_v1  ;;  %v344_v8 = vld [vmem:[%s277_s24] sm:$0xff]  ;;  %v874_v10 = vld [vmem:[%s1536_s21 + $0x30] sm:$0xff]   ;;  %v875_v12 = vld [vmem:[%s1536_s21 + $0x38] sm:$0xff]  }
  0xcb   : > { %690 = vmatprep.subr.bf16.mxu0 %v1145_v2  ;;  %v351_v14 = vld [vmem:[#allocation2] sm:$0xff] }
  0xce   : > { %691 = vmatpush3.bf16.msra.mxu0 %v869_v3  ;;  %v345_v9 = vstv %s343_s4 }
  0xcf   : > { %692 = vmatprep.subr.bf16.mxu0 %v1145_v2  ;;  %v346_v11 = vmul.f32 %v345_v9, %v344_v8  ;;  %p670_p11 = scmp.ne.s32.totalorder %s1750_s29, 1 }
  0xd0   : > { %v671_v21 = vld [vmem:[%s336_s14] ss:$0 sm:$0xff] (!%p670_p11)  ;;  %v1148_v23 = vmov (!%p670_p11), 0.0  }
  0xd1   : > { %vm347_vm1 = vcmp.ge.f32.partialorder %v346_v11, 1.0  ;;  %v473_v22 = vld [vmem:[%s286_s11] sm:$0xff] (!%p670_p11) }
  0xd2   : > { %693 = vmatpush3.bf16.msra.mxu0 %v870_v4  ;;  %vm668_vm2 = vmpackc.low %vm347_vm1, %vm347_vm1 }
  0xd3   : > { %694 = vmatprep.subr.bf16.mxu0 %v1145_v2 }
  0xd6   : > { %695 = vmatpush3.bf16.msra.mxu0 %v871_v5 }
  0xd7   : > { %696 = vmatprep.subr.bf16.mxu0 %v1145_v2 }
  0xda   : > { %697 = vmatpush3.bf16.msra.mxu0 %v872_v6 }
  0xdb   : > { %698 = vmatprep.subr.bf16.mxu0 %v1145_v2 }
  0xde   : > { %699 = vmatpush3.bf16.msra.mxu0 %v873_v7 }
  0xdf   : > { %700 = vmatprep.subr.bf16.mxu0 %v1145_v2 }
  0xe2   : > { %701 = vmatpush3.bf16.msra.mxu0 %v874_v10 }
  0xe3   : > { %702 = vmatprep.subr.bf16.mxu0 %v1145_v2 }
  0xe6   : > { %703 = vmatpush3.bf16.msra.mxu0 %v875_v12 }
  0xe9   : > { %705 = vmatmul.mubr.msk.bf16.vlgmr.msra.gmra.mrb[0].mxu0 %vm668_vm2, %v1147_v13 }
 0x1b9   : > { %461 = sbr.rel (%p670_p11) target bundleno = 460 (0x1cc), region = 56 }
 0x1bc   : > { %v450_v15 = vpop.f32.mrb[0].mxu0 }
 0x1bd   : > { %v456_v16 = vadd.f32 %v450_v15, %v351_v14  ;;  %v706_v17 = vpop.f32.mrb[1].mxu0 }
 0x1be   : > { %v453_v18 = vpop.f32.mrb[2].mxu0 }
 0x1bf   : > { %457 = vst [vmem:[#allocation2] sm:$0xff] %v456_v16  ;;  %v707_v19 = vpop.f32.mrb[3].mxu0 }
 0x1c6   : > { %v462_v20 = vld [vmem:[#allocation2] sm:$0xff] }
 0x1c7   : > { %vm470_vm3 = vcmp.ge.f32.partialorder %v462_v20, %v671_v21 }
 0x1c8   : > { %v672_v24 = vsel %vm470_vm3, 1.0, %v1148_v23 }
 0x1c9   : > { %v474_v25 = vadd.f32 %v672_v24, %v473_v22 }
 0x1cb   : > { %475 = vst [vmem:[%s332_s16] sm:$0xff] %v474_v25 }
 0x1cc PF: > { %s1752_s13 = sld [smem:[#allocation22_spill]]  ;;  %s1753_s28 = sld [smem:[#allocation21_spill]] }
 0x1cd   : > { %s1755_s26 = sld [smem:[#allocation26_spill]]  ;;  %s492_s20 = sshll.u32 %s332_s16, 4  ;;  %s1576_s20 = int_to_ptr.vmem [resolvable:$true] %s492_s20 }
 0x1ce   : > { %s1756_s14 = sld [smem:[#allocation36_spill]]  ;;  %s477_s4 = scalar_lea.sflag [#allocation7], %s284_s23 }
 0x1cf   : > { %s966_s29 = scalar_lea.vmem %s1576_s20, 128  ;;  %s1149_s24 = smov [#allocation11]  }
 0x1d0   : > { %p967_p10 = scmp.ne.s32.totalorder %s1576_s20, %s966_s29  ;;  %s970_s30 = sshll.u32 %s1149_s24, 4  ;;  %s971_s30 = int_to_ptr.vmem [resolvable:$false] %s970_s30 }
 0x1d1   : > { %s972_s16 = scalar_lea.vmem %s971_s30, 256  ;;  %p973_p12 = scmp.lt.s32.totalorder %s1576_s20, %s971_s30 }
 0x1d2   : > { %s674_s21 = sshll.u32 %s1752_s13, 1  ;;  %p974_p5 = scmp.lt.s32.totalorder %s972_s16, %s966_s29 }
 0x1d3   : > { %s488_s12 = sadd.s32 %s1753_s28, %s674_s21  ;;  %p1757_p8 = scmp.ne.s32.totalorder %s1755_s26, 0 }
 0x1d4   : > { %s675_s2 = sshll.u32 %s488_s12, 7  ;;  %p975_p0 = por %p974_p5, %p973_p12 }
 0x1d5   : > { %s490_s19 = scalar_lea.hbm %s1756_s14, %s675_s2  ;;  %p968_p6 = pnand %p967_p10, %p1757_p8 }
 0x1d7   : > { %p969_p7 = pneg %p968_p6 }
 0x1d9   : > { %p976_p13 = pnand %p975_p0, %p969_p7 }
 0x1db   : > { %979 = shalt.err (!%p976_p13)
}
 0x1dc   : > { %s980_s5 = scalar_lea.hbm %s490_s19, 128  ;;  %s984_s13 = scalar_lea.hbm %s1756_s14, 512 }
 0x1dd   : > { %p981_p2 = scmp.ne.s32.totalorder %s490_s19, %s980_s5  ;;  %p985_p9 = scmp.lt.u32.totalorder %s490_s19, %s1756_s14 }
 0x1de   : > { %p986_p4 = scmp.lt.u32.totalorder %s984_s13, %s980_s5  ;;  %p988_p10 = scmp.lt.u32.totalorder %s980_s5, %s490_s19 }
 0x1df   : > { %p982_p3 = pnand %p981_p2, %p1757_p8 }
 0x1e0   : > { %p987_p11 = por %p986_p4, %p985_p9 }
 0x1e1   : > { %p983_p1 = pneg %p982_p3 }
 0x1e2   : > { %p989_p6 = por %p988_p10, %p987_p11 }
 0x1e4   : > { %p990_p7 = pnand %p989_p6, %p983_p1 }
 0x1e6   : > { %993 = shalt.err (!%p990_p7)
}
 0x1e7   : > { %714 = dma.vmem_to_hbm [thread:$0]  (%p1757_p8), %s1576_s20, 128, %s490_s19, %s477_s4  }
 0x1e8 PF: > { %s1758_s21 = sld [smem:[#allocation17_spill]]  ;;  %p731_p12 = scmp.ge.s32.totalorder %s1136_s9, 2 }
 0x1e9   : > { %s1759_s12 = sld [smem:[#allocation27_spill]] }
 0x1ee   : > { %s504_s2 = sand.u32 1, %s1758_s21  }
 0x1ef   : > { %p1760_p5 = scmp.ne.s32.totalorder %s1759_s12, 0  ;;  %s505_s11 = scalar_lea.sflag [#allocation7], %s504_s2 }
 0x1f1   : > { %p727_p0 = pnand %p731_p12, %p1760_p5 }
 0x1f3   : > { %1071 = dma.done.wait (!%p727_p0), %s505_s11, 128  }
 0x1f4   : > { %1073 = vsyncadd (!%p727_p0), %s505_s11, 4294967168  ;;  %s25_s9 = sadd.s32 1, %s1136_s9   ;;  %s1762_s20 = sld [smem:[#allocation16_spill]] }
 0x1f5   : > { %p1604_p13 = scmp.ge.s32.totalorder %s25_s9, 10   ;;  %s1763_s26 = sld [smem:[#allocation33_spill]] }
 0x1f6   : > { %s1764_s23 = sld [smem:[#allocation18_spill]]  ;;  %s1765_s19 = sld [smem:[#allocation19_spill]] }
 0x1f7   : > { %s1766_s4 = sld [smem:[#allocation29_spill]]  ;;  %s1767_s16 = sld [smem:[#allocation31_spill]] }
 0x1f8   : > { %s1768_s5 = sld [smem:[#allocation32_spill]]  ;;  %s1769_s21 = smov %s1084_s22 }
 0x1f9   : > { %s1771_s24 = smov %s1096_s25  ;;  %s1772_s25 = smov %s1431_s0 }
 0x1fa   : > { %s1774_s0 = smov %s1108_s27  ;;  %s1775_s27 = smov %s1426_s10 }
 0x1fb   : > { %s1770_s22 = smov %s1763_s26  ;;  %s1776_s28 = smov %s1124_s6 }
 0x1fc   : > { %s1773_s26 = smov %s1765_s19  ;;  %s1777_s29 = smov %s1128_s7 }
 0x1fd   : > { %s1778_s30 = smov %s1132_s8  ;;  %s1779_s6 = smov %s1766_s4 }
 0x1fe   : > { %s1780_s7 = smov %s1767_s16  ;;  %s1781_s8 = smov %s1768_s5 }
 0x1ff   :  { %24 = sbr.rel (!%p1604_p13) target bundleno = 18 (0x12), region = 116 }
 0x206   :  { %510 = vsyncpa [#allocation6], 1 }
 0x207   :  { %512 = vsyncpa [#allocation6 + $0x1], 1 }
 0x208   :  { %513 = vsyncpa [#allocation9], 1 }
 0x209   :  { %515 = vsyncpa [#allocation9 + $0x1], 1 }
 0x20a   :  { %516 = vsyncpa [#allocation7], 1 }
 0x20b   :  { %518 = vsyncpa [#allocation7 + $0x1], 1 }

</bundles_post_ra>
